<compile_context>
chip_gen: v7x
topology: tpu7x:2x2x1
jax: 0.10.0
libtpu: 0.0.40
codegen_flags: <defaults>
</compile_context>

<pallas_src>
import functools
import math

import numpy as np

import jax
import jax.numpy as jnp
from jax.experimental import pallas as pl
from jax.experimental.pallas import tpu as pltpu


def _round_up(x, m):
    return ((x + m - 1) // m) * m


def _pick_group(n, c):
    """Largest G dividing n such that ideally (G*C) % 128 == 0 (lane-dense)."""
    target = 128 // math.gcd(c, 128)      # smallest G with G*C a multiple of 128
    return max(math.gcd(n, target), 1)


def _selection_matrix(g, p, c, dtype):
    """S[g*P*C + p*C + ch, g*C + ch] = 1: one matmul does the P-sum + packing."""
    rows = np.arange(g * p * c)
    cols = (rows // (p * c)) * c + (rows % c)
    s = np.zeros((g * p * c, g * c), dtype=np.float32)
    s[rows, cols] = 1.0
    return jnp.asarray(s, dtype=dtype)


def _mean_vfe_matmul_kernel(x_ref, inv_ref, s_ref, out_ref):
    # x_ref:   (tile_r, G*P*C) packed voxel features (G voxels per row)
    # inv_ref: (tile_r, G*C)   1/clamp(npts,1), one value per output lane
    # s_ref:   (G*P*C, G*C)    constant 0/1 selection matrix (VMEM-resident)
    # out_ref: (tile_r, G*C)   packed per-voxel means
    sums = jnp.dot(x_ref[...], s_ref[...], preferred_element_type=jnp.float32)
    out_ref[...] = (sums * inv_ref[...]).astype(out_ref.dtype)


def _mean_vfe_sliceadd_kernel(x_ref, inv_ref, out_ref, *, num_points, channels):
    # Fallback body for G == 1 (N has no lane-dense divisor): static unrolled
    # point-sum over C-wide slices, then one dense multiply by the precomputed
    # reciprocal.  acc stays f32.
    acc = x_ref[:, 0:channels].astype(jnp.float32)
    for q in range(1, num_points):
        acc = acc + x_ref[:, q * channels:(q + 1) * channels].astype(jnp.float32)
    out_ref[...] = (acc * inv_ref[...]).astype(out_ref.dtype)


def mean_vfe(voxels, voxel_num_points, *, vmem_budget_bytes=12 * 1024 * 1024):
    """voxels: (N, P, C); voxel_num_points: (N,). Returns (N, C) mean features."""
    n, p, c = voxels.shape
    if n == 0:
        return jnp.zeros((0, c), voxels.dtype)

    g = _pick_group(n, c)
    r = n // g
    in_w = g * p * c
    out_w = g * c

    # Free, contiguous views — no pad, no slice, no extra HBM copies.
    x2d = voxels.reshape(r, in_w)
    inv = 1.0 / jnp.maximum(voxel_num_points.astype(jnp.float32), 1.0)   # (N,)
    inv2d = jnp.repeat(inv, c).reshape(r, out_w)    # lane-dense, matches output

    # Rows per grid step from a ~12 MiB double-buffered VMEM budget
    # (lane widths rounded to 128 the way Mosaic will pad them).
    pad128 = lambda w: _round_up(w, 128)
    per_row_bytes = 4 * (pad128(in_w) + 2 * pad128(out_w))
    tile_r = max(8, (vmem_budget_bytes // (2 * per_row_bytes)) // 8 * 8)
    if r > 16:
        # Keep >= 2 grid steps so the "parallel" axis can split across the two
        # TensorCores on v7x.
        tile_r = min(tile_r, _round_up(pl.cdiv(r, 2), 8))
    if tile_r >= r:
        tile_r = r                      # single block: full-dim satisfies layout rule
    grid = (pl.cdiv(r, tile_r),)        # ragged tail -> boundary block (no padding)

    if g > 1:
        s = _selection_matrix(g, p, c, voxels.dtype)
        kernel = _mean_vfe_matmul_kernel
        operands = (x2d, inv2d, s)
        in_specs = [
            pl.BlockSpec((tile_r, in_w), lambda i: (i, 0)),
            pl.BlockSpec((tile_r, out_w), lambda i: (i, 0)),
            pl.BlockSpec((in_w, out_w), lambda i: (0, 0)),   # resident constant
        ]
    else:
        kernel = functools.partial(
            _mean_vfe_sliceadd_kernel, num_points=p, channels=c)
        operands = (x2d, inv2d)
        in_specs = [
            pl.BlockSpec((tile_r, in_w), lambda i: (i, 0)),
            pl.BlockSpec((tile_r, out_w), lambda i: (i, 0)),
        ]

    out = pl.pallas_call(
        kernel,
        out_shape=jax.ShapeDtypeStruct((r, out_w), voxels.dtype),
        grid=grid,
        in_specs=in_specs,
        out_specs=pl.BlockSpec((tile_r, out_w), lambda i: (i, 0)),
        compiler_params=pltpu.CompilerParams(
            dimension_semantics=("parallel",),      # 2-TC sharding on v7x
            vmem_limit_bytes=32 * 1024 * 1024,      # safe on v5e/v6e/v7x
        ),
    )(*operands)

    return out.reshape(n, c)


class MeanVFE:
    """JAX/Pallas port of mvseg3d MeanVFE (no learnable parameters)."""

    def __init__(self, voxel_feature_channel):
        self._voxel_feature_channel = voxel_feature_channel

    @property
    def voxel_feature_channel(self):
        return self._voxel_feature_channel

    def forward(self, batch_dict):
        voxels = batch_dict["voxels"]                       # (N, P, C)
        voxel_num_points = batch_dict["voxel_num_points"]   # (N,)
        batch_dict["voxel_features"] = mean_vfe(voxels, voxel_num_points)
        return batch_dict


if __name__ == "__main__":
    key = jax.random.PRNGKey(0)
    k1, k2, k3, k4, k5, k6 = jax.random.split(key, 6)

    def reference(vox, npts):
        return vox.sum(axis=1) / jnp.maximum(
            npts.reshape(-1, 1).astype(vox.dtype), 1.0)

    # Case 1: small, odd voxel count (not divisible by 32) -> G=1 fallback path,
    # 2-step grid with a partial (boundary) last block.
    n1, p1, c1 = 57, 8, 4
    vox1 = jax.random.normal(k1, (n1, p1, c1), dtype=jnp.float32)
    npts1 = jax.random.randint(k2, (n1,), 0, p1 + 1, dtype=jnp.int32)
    vfe = MeanVFE(voxel_feature_channel=c1)
    out1 = vfe.forward({"voxels": vox1, "voxel_num_points": npts1})["voxel_features"]
    out1 = jax.block_until_ready(out1)
    assert out1.shape == (n1, c1)
    assert jnp.allclose(out1, reference(vox1, npts1), atol=1e-4, rtol=1e-4)

    # Case 2: divisible by 32 -> fully lane-dense packed (selection-matmul) path,
    # 2-step grid that divides evenly.
    n2, p2, c2 = 4096, 8, 4
    vox2 = jax.random.normal(k3, (n2, p2, c2), dtype=jnp.float32)
    npts2 = jax.random.randint(k4, (n2,), 0, p2 + 1, dtype=jnp.int32)
    out2 = jax.block_until_ready(mean_vfe(vox2, npts2))
    assert out2.shape == (n2, c2)
    assert jnp.allclose(out2, reference(vox2, npts2), atol=1e-4, rtol=1e-4)

    # Case 3: divisible by 32 but ragged w.r.t. the tile -> packed path with a
    # partial boundary block (OOB output rows dropped by Pallas).
    n3, p3, c3 = 2080, 8, 4
    vox3 = jax.random.normal(k5, (n3, p3, c3), dtype=jnp.float32)
    npts3 = jax.random.randint(k6, (n3,), 0, p3 + 1, dtype=jnp.int32)
    out3 = jax.block_until_ready(mean_vfe(vox3, npts3))
    assert out3.shape == (n3, c3)
    assert jnp.allclose(out3, reference(vox3, npts3), atol=1e-4, rtol=1e-4)

    print("KERNEL_OK")
</pallas_src>

<mosaic_0001>
module attributes {stable_mosaic.version = 11 : i64} {
  func.func @_mean_vfe_sliceadd_kernel(%arg0: i32, %arg1: memref<32x32xf32, #tpu.memory_space<vmem>>, %arg2: memref<32x4xf32, #tpu.memory_space<vmem>>, %arg3: memref<32x4xf32, #tpu.memory_space<vmem>>) attributes {dimension_semantics = [#tpu.dimension_semantics<parallel>], iteration_bounds = array<i64: 2>, scalar_prefetch = 0 : i64, scratch_operands = 0 : i64, tpu.core_type = #tpu.core_type<tc>, window_params = [{transform_indices = @transform_0, window_bounds = array<i64: 32, 32>}, {transform_indices = @transform_1, window_bounds = array<i64: 32, 4>}, {transform_indices = @transform_2, window_bounds = array<i64: 32, 4>}]} {
    %c0 = arith.constant 0 : index
    %c0_0 = arith.constant 0 : index
    %0 = vector.load %arg1[%c0, %c0_0] : memref<32x32xf32, #tpu.memory_space<vmem>>, vector<32x4xf32>
    %c0_1 = arith.constant 0 : index
    %c4 = arith.constant 4 : index
    %1 = vector.load %arg1[%c0_1, %c4] : memref<32x32xf32, #tpu.memory_space<vmem>>, vector<32x4xf32>
    %2 = arith.addf %0, %1 : vector<32x4xf32>
    %c0_2 = arith.constant 0 : index
    %c8 = arith.constant 8 : index
    %3 = vector.load %arg1[%c0_2, %c8] : memref<32x32xf32, #tpu.memory_space<vmem>>, vector<32x4xf32>
    %4 = arith.addf %2, %3 : vector<32x4xf32>
    %c0_3 = arith.constant 0 : index
    %c12 = arith.constant 12 : index
    %5 = vector.load %arg1[%c0_3, %c12] : memref<32x32xf32, #tpu.memory_space<vmem>>, vector<32x4xf32>
    %6 = arith.addf %4, %5 : vector<32x4xf32>
    %c0_4 = arith.constant 0 : index
    %c16 = arith.constant 16 : index
    %7 = vector.load %arg1[%c0_4, %c16] : memref<32x32xf32, #tpu.memory_space<vmem>>, vector<32x4xf32>
    %8 = arith.addf %6, %7 : vector<32x4xf32>
    %c0_5 = arith.constant 0 : index
    %c20 = arith.constant 20 : index
    %9 = vector.load %arg1[%c0_5, %c20] : memref<32x32xf32, #tpu.memory_space<vmem>>, vector<32x4xf32>
    %10 = arith.addf %8, %9 : vector<32x4xf32>
    %c0_6 = arith.constant 0 : index
    %c24 = arith.constant 24 : index
    %11 = vector.load %arg1[%c0_6, %c24] : memref<32x32xf32, #tpu.memory_space<vmem>>, vector<32x4xf32>
    %12 = arith.addf %10, %11 : vector<32x4xf32>
    %c0_7 = arith.constant 0 : index
    %c28 = arith.constant 28 : index
    %13 = vector.load %arg1[%c0_7, %c28] : memref<32x32xf32, #tpu.memory_space<vmem>>, vector<32x4xf32>
    %14 = arith.addf %12, %13 : vector<32x4xf32>
    %c0_8 = arith.constant 0 : index
    %c0_9 = arith.constant 0 : index
    %15 = vector.load %arg2[%c0_8, %c0_9] : memref<32x4xf32, #tpu.memory_space<vmem>>, vector<32x4xf32>
    %16 = arith.mulf %14, %15 : vector<32x4xf32>
    %c0_10 = arith.constant 0 : index
    %c0_11 = arith.constant 0 : index
    %17 = vector.load %arg3[%c0_10, %c0_11] : memref<32x4xf32, #tpu.memory_space<vmem>>, vector<32x4xf32>
    tpu.vector_store %arg3[%c0_10, %c0_11], %16 {strides = array<i32>} : memref<32x4xf32, #tpu.memory_space<vmem>>, vector<32x4xf32>,
    return
  }
  func.func @transform_0(%arg0: i32) -> (i32, i32) {
    %c0_i32 = arith.constant 0 : i32
    %c0_i32_0 = arith.constant 0 : i32
    return %arg0, %c0_i32 : i32, i32
  }
  func.func @transform_1(%arg0: i32) -> (i32, i32) {
    %c0_i32 = arith.constant 0 : i32
    %c0_i32_0 = arith.constant 0 : i32
    return %arg0, %c0_i32 : i32, i32
  }
  func.func @transform_2(%arg0: i32) -> (i32, i32) {
    %c0_i32 = arith.constant 0 : i32
    %c0_i32_0 = arith.constant 0 : i32
    return %arg0, %c0_i32 : i32, i32
  }
}

</mosaic_0001>

<bundles_post_ra>
// kernel: tpu_custom_call.1
= control target key start
LH: loop header
LB: loop body
LE: loop exit
PB: predicated region body
PF: predicated region fallthrough
CT: control target
= control target key end

     0   :  { %s428_s9 = smov 0   ;;  %s467_s0 = inlined_call_operand.vmem [shape: f32[57,32], index: 0, kind: input, shape index: {}]   ;;  %s468_s1 = inlined_call_operand.vmem [shape: f32[57,4], index: 1, kind: input, shape index: {}]   ;;  %s469_s2 = inlined_call_operand.vmem [shape: f32[57,4], index: 2, kind: output, shape index: {}]  }
   0x1 LB: > { %s370_s10 = sadd.s32 4294967295, %s404_s9   ;;  %p374_p0 = scmp.ge.s32.totalorder %s404_s9, 1  ;;  %s404_s9 = sphi %s428_s9, %s12_s9  }
   0x2   : > { %p124_p1 = scmp.lt.s32.totalorder %s404_s9, 3 }
   0x4   : > { %p125_p2 = pnand %p374_p0, %p124_p1 }
   0x5   : > { %s375_s11 = sshll.u32 (!%p125_p2), %s370_s10, 2  ;;  %s406_s16 = smov (!%p125_p2), 124   ;;  %vm297_vm0 = vcmask (!%p125_p2), 31744  }
   0x6   : > { %128 = sbr.rel (%p125_p2) target bundleno = 189 (0xbd), region = 28  ;;  %p152_p3 = scmp.lt.s32.totalorder (!%p125_p2), %s375_s11, 7 }
   0x7   : > { %s407_s17 = smov (!%p125_p2), 120   ;;  %s408_s18 = smov (!%p125_p2), 116  }
   0x8   : > { %s409_s19 = smov (!%p125_p2), 112   ;;  %s410_s20 = smov (!%p125_p2), 108  }
   0x9   : > { %s411_s21 = smov (!%p125_p2), 104   ;;  %s412_s22 = smov (!%p125_p2), 100  }
   0xd   : > { %s471_s11 = smov (!%p152_p3, %s375_s11), 7 }
   0xe   : > { %s436_s12 = sshll.u32 %s471_s11, 3 }
   0xf   : > { %s155_s15 = scalar_lea.vmem %s467_s0, %s436_s12  ;;  %s161_s25 = scalar_lea.vmem %s468_s1, %s436_s12 }
  0x10   : > { %v442_v0 = vld [vmem:[%s155_s15 + $0x10] sm:$0xff]  ;;  %v169_v1 = vld [vmem:[%s155_s15] sm:$0xff]  ;;  %v170_v2 = vld [vmem:[%s155_s15 + $0x8] sm:$0xff]  ;;  %s167_s28 = scalar_lea.vmem %s469_s2, %s436_s12 }
  0x11   : > { %181 = vrot.lane.b32.xlu1 %v442_v0, %s406_s16  ;;  %177 = vrot.lane.b32.xlu0 %v169_v1, %s406_s16  ;;  %v172_v3 = vld [vmem:[%s155_s15 + $0x18] sm:$0xff]  ;;  %v289_v40 = vld [vmem:[%s161_s25] sm:$0xff] }
  0x12   : > { %v290_v51 = vld [vmem:[%s161_s25 + $0x8] sm:$0xff]  ;;  %v292_v60 = vld [vmem:[%s161_s25 + $0x18] sm:$0xff]  ;;  %v291_v62 = vld [vmem:[%s161_s25 + $0x10] sm:$0xff] }
  0x15   : > { %193 = vrot.lane.b32.xlu1 %v169_v1, %s407_s17  ;;  %179 = vrot.lane.b32.xlu0 %v170_v2, %s406_s16 }
  0x19   : > { %195 = vrot.lane.b32.xlu1 %v170_v2, %s407_s17  ;;  %183 = vrot.lane.b32.xlu0 %v172_v3, %s406_s16 }
  0x1d   : > { %209 = vrot.lane.b32.xlu1 %v169_v1, %s408_s18  ;;  %197 = vrot.lane.b32.xlu0 %v442_v0, %s407_s17 }
  0x21   : > { %211 = vrot.lane.b32.xlu1 %v170_v2, %s408_s18  ;;  %199 = vrot.lane.b32.xlu0 %v172_v3, %s407_s17 }
  0x25   : > { %225 = vrot.lane.b32.xlu1 %v169_v1, %s409_s19  ;;  %213 = vrot.lane.b32.xlu0 %v442_v0, %s408_s18 }
  0x29   : > { %227 = vrot.lane.b32.xlu1 %v170_v2, %s409_s19  ;;  %215 = vrot.lane.b32.xlu0 %v172_v3, %s408_s18 }
  0x2d   : > { %241 = vrot.lane.b32.xlu1 %v169_v1, %s410_s20  ;;  %229 = vrot.lane.b32.xlu0 %v442_v0, %s409_s19 }
  0x31   : > { %243 = vrot.lane.b32.xlu1 %v170_v2, %s410_s20  ;;  %231 = vrot.lane.b32.xlu0 %v172_v3, %s409_s19 }
  0x35   : > { %257 = vrot.lane.b32.xlu1 %v169_v1, %s411_s21  ;;  %245 = vrot.lane.b32.xlu0 %v442_v0, %s410_s20 }
  0x39   : > { %259 = vrot.lane.b32.xlu1 %v170_v2, %s411_s21  ;;  %247 = vrot.lane.b32.xlu0 %v172_v3, %s410_s20 }
  0x3d   : > { %273 = vrot.lane.b32.xlu1 %v169_v1, %s412_s22  ;;  %261 = vrot.lane.b32.xlu0 %v442_v0, %s411_s21 }
  0x41   : > { %275 = vrot.lane.b32.xlu1 %v170_v2, %s412_s22  ;;  %263 = vrot.lane.b32.xlu0 %v172_v3, %s411_s21 }
  0x45   : > { %279 = vrot.lane.b32.xlu1 %v172_v3, %s412_s22  ;;  %277 = vrot.lane.b32.xlu0 %v442_v0, %s412_s22 }
  0x83   : > { %v182_v4 = vpop.permute.xlu1 %181  ;;  %v178_v5 = vpop.permute.xlu0 %177 }
  0x84   : > { %v189_v22 = vadd.f32 %v178_v5, %v169_v1  ;;  %v191_v32 = vadd.f32 %v182_v4, %v442_v0 }
  0x87   : > { %v194_v6 = vpop.permute.xlu1 %193  ;;  %v180_v7 = vpop.permute.xlu0 %179 }
  0x88   : > { %v205_v23 = vadd.f32 %v194_v6, %v189_v22  ;;  %v190_v26 = vadd.f32 %v180_v7, %v170_v2 }
  0x8b   : > { %v196_v8 = vpop.permute.xlu1 %195  ;;  %v184_v9 = vpop.permute.xlu0 %183 }
  0x8c   : > { %v206_v28 = vadd.f32 %v196_v8, %v190_v26  ;;  %v192_v33 = vadd.f32 %v184_v9, %v172_v3 }
  0x8f   : > { %v210_v10 = vpop.permute.xlu1 %209  ;;  %v198_v11 = vpop.permute.xlu0 %197 }
  0x90   : > { %v221_v27 = vadd.f32 %v210_v10, %v205_v23  ;;  %v207_v36 = vadd.f32 %v198_v11, %v191_v32 }
  0x93   : > { %v212_v12 = vpop.permute.xlu1 %211  ;;  %v200_v13 = vpop.permute.xlu0 %199 }
  0x94   : > { %v222_v34 = vadd.f32 %v212_v12, %v206_v28  ;;  %v208_v37 = vadd.f32 %v200_v13, %v192_v33 }
  0x97   : > { %v226_v14 = vpop.permute.xlu1 %225  ;;  %v214_v15 = vpop.permute.xlu0 %213 }
  0x98   : > { %v237_v29 = vadd.f32 %v226_v14, %v221_v27  ;;  %v223_v43 = vadd.f32 %v214_v15, %v207_v36 }
  0x9b   : > { %v228_v16 = vpop.permute.xlu1 %227  ;;  %v216_v17 = vpop.permute.xlu0 %215 }
  0x9c   : > { %v238_v38 = vadd.f32 %v228_v16, %v222_v34  ;;  %v224_v44 = vadd.f32 %v216_v17, %v208_v37 }
  0x9f   : > { %v242_v18 = vpop.permute.xlu1 %241  ;;  %v230_v19 = vpop.permute.xlu0 %229 }
  0xa0   : > { %v253_v35 = vadd.f32 %v242_v18, %v237_v29  ;;  %v239_v47 = vadd.f32 %v230_v19, %v223_v43 }
  0xa3   : > { %v244_v20 = vpop.permute.xlu1 %243  ;;  %v232_v21 = vpop.permute.xlu0 %231 }
  0xa4   : > { %v254_v45 = vadd.f32 %v244_v20, %v238_v38  ;;  %v240_v48 = vadd.f32 %v232_v21, %v224_v44 }
  0xa7   : > { %v258_v24 = vpop.permute.xlu1 %257  ;;  %v246_v25 = vpop.permute.xlu0 %245 }
  0xa8   : > { %v269_v39 = vadd.f32 %v258_v24, %v253_v35  ;;  %v255_v54 = vadd.f32 %v246_v25, %v239_v47 }
  0xab   : > { %v260_v30 = vpop.permute.xlu1 %259  ;;  %v248_v31 = vpop.permute.xlu0 %247 }
  0xac   : > { %v270_v49 = vadd.f32 %v260_v30, %v254_v45  ;;  %v256_v55 = vadd.f32 %v248_v31, %v240_v48 }
  0xaf   : > { %v274_v41 = vpop.permute.xlu1 %273  ;;  %v262_v42 = vpop.permute.xlu0 %261 }
  0xb0   : > { %v285_v46 = vadd.f32 %v274_v41, %v269_v39  ;;  %v271_v57 = vadd.f32 %v262_v42, %v255_v54 }
  0xb2   : > { %v293_v50 = vmul.f32 %v289_v40, %v285_v46 }
  0xb3   : > { %v276_v52 = vpop.permute.xlu1 %275  ;;  %v264_v53 = vpop.permute.xlu0 %263 }
  0xb4   : > { %298 = vst.msk [vmem:[%s167_s28] sm:$0xff] %vm297_vm0, %v293_v50  ;;  %v286_v56 = vadd.f32 %v276_v52, %v270_v49  ;;  %v272_v59 = vadd.f32 %v264_v53, %v256_v55 }
  0xb6   : > { %v294_v58 = vmul.f32 %v290_v51, %v286_v56 }
  0xb7   : > { %v280_v61 = vpop.permute.xlu1 %279  ;;  %v278_v63 = vpop.permute.xlu0 %277 }
  0xb8   : > { %299 = vst.msk [vmem:[%s167_s28 + $0x8] sm:$0xff] %vm297_vm0, %v294_v58  ;;  %v288_v0 = vadd.f32 %v280_v61, %v272_v59  ;;  %v287_v1 = vadd.f32 %v278_v63, %v271_v57 }
  0xba   : > { %v296_v2 = vmul.f32 %v292_v60, %v288_v0  ;;  %v295_v3 = vmul.f32 %v291_v62, %v287_v1 }
  0xbc   : > { %300 = vst.msk [vmem:[%s167_s28 + $0x10] sm:$0xff] %vm297_vm0, %v295_v3  ;;  %301 = vst.msk [vmem:[%s167_s28 + $0x18] sm:$0xff] %vm297_vm0, %v296_v2 }
  0xbd PF: > { %s12_s9 = sadd.s32 1, %s404_s9  }
  0xbe   : > { %p9_p4 = scmp.ge.s32.totalorder %s12_s9, 4  }
  0xc0   :  { %11 = sbr.rel (!%p9_p4) target bundleno = 1 (0x1), region = 61 }

</bundles_post_ra>
